<compile_context>
chip_gen: v7x
topology: tpu7x:2x2x1
jax: 0.10.0
libtpu: 0.0.40
codegen_flags: <defaults>
</compile_context>

<pallas_src>
import functools

import jax
import jax.numpy as jnp
from jax.experimental import pallas as pl
from jax.experimental.pallas import tpu as pltpu


_NCORES = 2                       # leading grid axis, sharded across TCs on v7x;
                                  # runs sequentially (harmless) on 1-TC chips.
_MAX_TILE_ROWS = 1024             # row-tile target (v6e roofline sweet spot)
_VMEM_TILE_BUDGET = 24 * 1024 * 1024   # double-buffered tiles; headroom vs v7x 64 MiB


def _block_vmem_bytes(rows, cols, itemsize):
    """VMEM footprint of one (rows, cols) block, padded to native tiling."""
    lanes = -(-cols // 128) * 128
    sublane_pack = 8 * max(1, 4 // itemsize)   # 8 for f32/i32, 32 for i8
    padded_rows = -(-rows // sublane_pack) * sublane_pack
    return padded_rows * lanes * itemsize


def _per_step_bytes(tile_rows, num_cls_x, n, e_gt_itemsize):
    return (2 * _block_vmem_bytes(tile_rows, num_cls_x, 4)     # x_gt, x_prd
            + _block_vmem_bytes(tile_rows, n, e_gt_itemsize)   # e_gt
            + _block_vmem_bytes(tile_rows, n, 4))              # e_prd


def _choose_tile_rows(total_rows, num_cls_x, n, e_gt_itemsize):
    tile = min(total_rows, _MAX_TILE_ROWS)
    if tile < total_rows:
        # Tiled path: keep the tile a power-of-two multiple of 32 so both the
        # f32 (8-row) and int8 (32-row) sublane tilings are respected.
        while (tile > 32 and
               2 * _per_step_bytes(tile, num_cls_x, n, e_gt_itemsize)
               > _VMEM_TILE_BUDGET):
            tile //= 2
    return tile


def _fsq_loss_kernel(x_gt_ref, x_prd_ref, e_gt_ref, e_prd_ref,
                     part_ref, acc_ref,
                     *, scale, total_rows, tile_rows, steps_per_core,
                     num_cls_x):
    c = pl.program_id(0)           # core (parallel) axis
    s = pl.program_id(1)           # reduction (arbitrary) axis

    @pl.when(s == 0)
    def _init():
        acc_ref[0] = 0.0           # sum of squared error, x
        acc_ref[1] = 0.0           # sum of squared error, e
        acc_ref[2] = 0.0           # argmax matches, x
        acc_ref[3] = 0.0           # rounded-class matches, e

    # First logical row handled by this grid step.
    row0 = (c * steps_per_core + s) * tile_rows

    # Skip all vector work on fully out-of-bounds steps (surplus core steps on
    # tiny problems / clamped tail re-reads); they contribute nothing.
    @pl.when(row0 < total_rows)
    def _accumulate():
        x_gt = x_gt_ref[...].astype(jnp.float32)      # (tile_rows, num_cls_x)
        x_prd = x_prd_ref[...].astype(jnp.float32)
        e_gt_i = e_gt_ref[...].astype(jnp.int32)      # (tile_rows, n)
        e_prd = e_prd_ref[...].astype(jnp.float32)

        # Rows past the end of the array (ragged last tile) are masked out of
        # every sum.
        row_ids = row0 + jax.lax.broadcasted_iota(jnp.int32, (tile_rows, 1), 0)
        valid = row_ids < total_rows                  # (tile_rows, 1) bool

        # ---- loss_x partial sum (means applied in the wrapper; per-batch
        # mean-of-means == global mean because batches are equal-sized). -----
        dx = jnp.where(valid, x_gt - x_prd, 0.0)
        acc_ref[0] += jnp.sum(dx * dx)

        # ---- loss_e partial sum ----
        e_gt_f = e_gt_i.astype(jnp.float32) * jnp.float32(1.0 / scale)
        de = jnp.where(valid, e_gt_f - e_prd, 0.0)
        acc_ref[1] += jnp.sum(de * de)

        # ---- x accuracy: argmax (first occurrence of the max) match ----
        lane = jax.lax.broadcasted_iota(jnp.int32, x_gt.shape, 1)
        big = jnp.int32(num_cls_x)
        amax_gt = jnp.min(
            jnp.where(x_gt == jnp.max(x_gt, axis=-1, keepdims=True), lane, big),
            axis=-1, keepdims=True)
        amax_prd = jnp.min(
            jnp.where(x_prd == jnp.max(x_prd, axis=-1, keepdims=True), lane, big),
            axis=-1, keepdims=True)
        acc_ref[2] += jnp.sum(
            jnp.where(valid & (amax_gt == amax_prd), 1.0, 0.0))

        # ---- e accuracy: round predictions to classes and compare to e_gt
        # directly (no round((e_gt/scale)*scale) round-trip on the gt). ----
        e_prd_r = jnp.round(e_prd * jnp.float32(scale)).astype(jnp.int32)
        acc_ref[3] += jnp.sum(
            jnp.where(valid & (e_prd_r == e_gt_i), 1.0, 0.0))

    @pl.when(s == steps_per_core - 1)
    def _finalize():
        # Pack the 4 per-core partial sums into lanes 0..3 of this core's
        # (8, 128) output block (lane-dense, unmasked stores).
        lane128 = jax.lax.broadcasted_iota(jnp.int32, (8, 128), 1)
        out = jnp.where(lane128 == 0, acc_ref[0],
              jnp.where(lane128 == 1, acc_ref[1],
              jnp.where(lane128 == 2, acc_ref[2],
              jnp.where(lane128 == 3, acc_ref[3], 0.0))))
        part_ref[...] = out.astype(jnp.float32)


def fsq_loss(x_gt, e_gt, x_prd, e_prd, *, scale, weight=5.0):
    """Pallas-TPU FSQLoss.forward. Returns (loss, e_acc, x_acc) f32 scalars."""
    bs, n, num_cls_x = x_gt.shape
    total_rows = bs * n

    # Reshape-only 2-D row views (contiguous, so no data movement).
    x_gt2 = x_gt.reshape(total_rows, num_cls_x)
    x_prd2 = x_prd.reshape(total_rows, num_cls_x)
    e_gt2 = e_gt.reshape(total_rows, n)
    e_prd2 = e_prd.reshape(total_rows, n)

    e_itemsize = jnp.dtype(e_gt2.dtype).itemsize
    tile_rows = _choose_tile_rows(total_rows, num_cls_x, n, e_itemsize)
    n_blocks = pl.cdiv(total_rows, tile_rows)
    steps_per_core = pl.cdiv(n_blocks, _NCORES)

    # Clamp the logical row-block index so surplus steps (second core on a
    # tiny problem, ragged tail) re-read an in-bounds block; their rows are
    # masked / skipped inside the kernel.
    def row_block(c, s):
        return jnp.minimum(c * steps_per_core + s, n_blocks - 1)

    x_spec = pl.BlockSpec((tile_rows, num_cls_x),
                          lambda c, s: (row_block(c, s), 0))
    e_spec = pl.BlockSpec((tile_rows, n),
                          lambda c, s: (row_block(c, s), 0))

    per_step = _per_step_bytes(tile_rows, num_cls_x, n, e_itemsize)
    vmem_limit = int(min(48 << 20, max(2 * per_step + (2 << 20), 8 << 20)))

    kernel = functools.partial(
        _fsq_loss_kernel,
        scale=float(scale), total_rows=total_rows, tile_rows=tile_rows,
        steps_per_core=steps_per_core, num_cls_x=num_cls_x)

    partials = pl.pallas_call(
        kernel,
        out_shape=jax.ShapeDtypeStruct((_NCORES * 8, 128), jnp.float32),
        grid_spec=pltpu.PrefetchScalarGridSpec(
            num_scalar_prefetch=0,
            grid=(_NCORES, steps_per_core),
            in_specs=[x_spec, x_spec, e_spec, e_spec],
            out_specs=pl.BlockSpec((8, 128), lambda c, s: (c, 0)),
            scratch_shapes=[pltpu.SMEM((4,), jnp.float32)]),
        compiler_params=pltpu.CompilerParams(
            dimension_semantics=("parallel", "arbitrary"),
            vmem_limit_bytes=vmem_limit),
    )(x_gt2, x_prd2, e_gt2, e_prd2)

    # Cross-core combine + means: trivial scalar work in the wrapper.
    sums = partials.reshape(_NCORES, 8, 128)[:, 0, :4].sum(axis=0)
    sum_sq_x, sum_sq_e = sums[0], sums[1]
    sum_match_x, sum_match_e = sums[2], sums[3]

    loss = (sum_sq_x / jnp.float32(total_rows * num_cls_x)
            + jnp.float32(weight) * sum_sq_e / jnp.float32(total_rows * n))
    x_acc = sum_match_x / jnp.float32(total_rows)
    e_acc = sum_match_e / jnp.float32(total_rows * n)
    return loss, e_acc, x_acc


def _fsq_loss_ref(x_gt, e_gt, x_prd, e_prd, *, scale, weight=5.0):
    """Pure-JAX reference mirroring the PyTorch module."""
    loss_x = jnp.square(x_gt - x_prd).reshape(x_gt.shape[0], -1).mean(-1)
    e_gt_f = e_gt.astype(jnp.float32) / scale
    loss_e = jnp.square(e_gt_f - e_prd).reshape(e_gt.shape[0], -1).mean(-1)
    loss = loss_x.mean() + weight * loss_e.mean()
    x_acc = (jnp.argmax(x_gt, -1) == jnp.argmax(x_prd, -1)).mean()
    e_acc = (jnp.round(e_gt_f * scale).astype(jnp.int32)
             == jnp.round(e_prd * scale).astype(jnp.int32)).mean()
    return loss, e_acc.astype(jnp.float32), x_acc.astype(jnp.float32)


if __name__ == "__main__":
    # FSQLoss has no learnable parameters; `scale` is the only init argument.
    scale = 7.0
    bs, n, num_cls_x = 2, 8, 16

    key = jax.random.PRNGKey(0)
    k1, k2, k3, k4 = jax.random.split(key, 4)

    # x_gt: one-hot {0,1}^(bs, n, num_cls_x)
    gt_idx = jax.random.randint(k1, (bs, n), 0, num_cls_x)
    x_gt = jax.nn.one_hot(gt_idx, num_cls_x, dtype=jnp.float32)
    # x_prd: real-valued predictions
    x_prd = jax.random.normal(k2, (bs, n, num_cls_x), dtype=jnp.float32)
    # e_gt: integer edge classes, shipped as int8 to quarter its HBM traffic
    e_gt = jax.random.randint(k3, (bs, n, n), 0, int(scale) + 1).astype(jnp.int8)
    # e_prd: [0, 1)
    e_prd = jax.random.uniform(k4, (bs, n, n), dtype=jnp.float32)

    loss, e_acc, x_acc = fsq_loss(x_gt, e_gt, x_prd, e_prd,
                                  scale=scale, weight=5.0)
    jax.block_until_ready((loss, e_acc, x_acc))

    # sanity check against pure-JAX reference
    loss_r, e_acc_r, x_acc_r = _fsq_loss_ref(x_gt, e_gt, x_prd, e_prd,
                                             scale=scale, weight=5.0)
    assert jnp.allclose(loss, loss_r, atol=1e-5), (loss, loss_r)
    assert jnp.allclose(e_acc, e_acc_r, atol=1e-6), (e_acc, e_acc_r)
    assert jnp.allclose(x_acc, x_acc_r, atol=1e-6), (x_acc, x_acc_r)

    print("KERNEL_OK")
</pallas_src>

<mosaic_0001>
module attributes {stable_mosaic.version = 11 : i64} {
  func.func @_fsq_loss_kernel(%arg0: i32, %arg1: i32, %arg2: memref<16x16xf32, #tpu.memory_space<vmem>>, %arg3: memref<16x16xf32, #tpu.memory_space<vmem>>, %arg4: memref<16x8xi8, #tpu.memory_space<vmem>>, %arg5: memref<16x8xf32, #tpu.memory_space<vmem>>, %arg6: memref<8x128xf32, #tpu.memory_space<vmem>>, %arg7: memref<4xf32, #tpu.memory_space<smem>>) attributes {dimension_semantics = [#tpu.dimension_semantics<parallel>, #tpu.dimension_semantics<arbitrary>], iteration_bounds = array<i64: 2, 1>, scalar_prefetch = 0 : i64, scratch_operands = 1 : i64, tpu.core_type = #tpu.core_type<tc>, window_params = [{transform_indices = @transform_0, window_bounds = array<i64: 16, 16>}, {transform_indices = @transform_1, window_bounds = array<i64: 16, 16>}, {transform_indices = @transform_2, window_bounds = array<i64: 16, 8>}, {transform_indices = @transform_3, window_bounds = array<i64: 16, 8>}, {transform_indices = @transform_4, window_bounds = array<i64: 8, 128>}]} {
    %c0_i32 = arith.constant 0 : i32
    %0 = arith.cmpi eq, %arg1, %c0_i32 : i32
    %1 = arith.extui %0 : i1 to i32
    %c0_i32_0 = arith.constant 0 : i32
    %2 = arith.cmpi ne, %1, %c0_i32_0 : i32
    scf.if %2 {
      %cst = arith.constant 0.000000e+00 : f32
      %c0 = arith.constant 0 : index
      %12 = memref.load %arg7[%c0] : memref<4xf32, #tpu.memory_space<smem>>
      memref.store %cst, %arg7[%c0] : memref<4xf32, #tpu.memory_space<smem>>
      %cst_5 = arith.constant 0.000000e+00 : f32
      %c1 = arith.constant 1 : index
      %13 = memref.load %arg7[%c1] : memref<4xf32, #tpu.memory_space<smem>>
      memref.store %cst_5, %arg7[%c1] : memref<4xf32, #tpu.memory_space<smem>>
      %cst_6 = arith.constant 0.000000e+00 : f32
      %c2 = arith.constant 2 : index
      %14 = memref.load %arg7[%c2] : memref<4xf32, #tpu.memory_space<smem>>
      memref.store %cst_6, %arg7[%c2] : memref<4xf32, #tpu.memory_space<smem>>
      %cst_7 = arith.constant 0.000000e+00 : f32
      %c3 = arith.constant 3 : index
      %15 = memref.load %arg7[%c3] : memref<4xf32, #tpu.memory_space<smem>>
      memref.store %cst_7, %arg7[%c3] : memref<4xf32, #tpu.memory_space<smem>>
    } else {
    }
    %c1_i32 = arith.constant 1 : i32
    %3 = arith.muli %arg0, %c1_i32 : i32
    %4 = arith.addi %3, %arg1 : i32
    %c16_i32 = arith.constant 16 : i32
    %5 = arith.muli %4, %c16_i32 : i32
    %c16_i32_1 = arith.constant 16 : i32
    %6 = arith.cmpi slt, %5, %c16_i32_1 : i32
    %7 = arith.extui %6 : i1 to i32
    %c0_i32_2 = arith.constant 0 : i32
    %8 = arith.cmpi ne, %7, %c0_i32_2 : i32
    scf.if %8 {
      %c0 = arith.constant 0 : index
      %c0_5 = arith.constant 0 : index
      %12 = vector.load %arg2[%c0, %c0_5] : memref<16x16xf32, #tpu.memory_space<vmem>>, vector<16x16xf32>
      %c0_6 = arith.constant 0 : index
      %c0_7 = arith.constant 0 : index
      %13 = vector.load %arg3[%c0_6, %c0_7] : memref<16x16xf32, #tpu.memory_space<vmem>>, vector<16x16xf32>
      %c0_8 = arith.constant 0 : index
      %c0_9 = arith.constant 0 : index
      %14 = vector.load %arg4[%c0_8, %c0_9] : memref<16x8xi8, #tpu.memory_space<vmem>>, vector<16x8xi8>
      %15 = arith.extsi %14 : vector<16x8xi8> to vector<16x8xi32>
      %c0_10 = arith.constant 0 : index
      %c0_11 = arith.constant 0 : index
      %16 = vector.load %arg5[%c0_10, %c0_11] : memref<16x8xf32, #tpu.memory_space<vmem>>, vector<16x8xf32>
      %17 = tpu.iota {dimensions = array<i32: 0>} : vector<16x1xi32>
      %18 = vector.broadcast %5 : i32 to vector<16x1xi32>
      %19 = arith.addi %18, %17 : vector<16x1xi32>
      %c16_i32_12 = arith.constant 16 : i32
      %20 = vector.broadcast %c16_i32_12 : i32 to vector<16x1xi32>
      %21 = arith.cmpi slt, %19, %20 : vector<16x1xi32>
      %22 = arith.subf %12, %13 : vector<16x16xf32>
      %cst = arith.constant 0.000000e+00 : f32
      %23 = vector.shape_cast %21 : vector<16x1xi1> to vector<16x1xi1>
      %24 = vector.broadcast %23 : vector<16x1xi1> to vector<16x16xi1>
      %25 = vector.broadcast %cst : f32 to vector<16x16xf32>
      %26 = arith.select %24, %22, %25 : vector<16x16xi1>, vector<16x16xf32>
      %c0_13 = arith.constant 0 : index
      %27 = memref.load %arg7[%c0_13] : memref<4xf32, #tpu.memory_space<smem>>
      %28 = arith.mulf %26, %26 : vector<16x16xf32>
      %29 = vector.shape_cast %28 : vector<16x16xf32> to vector<1x16x16xf32>
      %cst_14 = arith.constant dense<0.000000e+00> : vector<1xf32>
      %30 = vector.multi_reduction <add>, %29, %cst_14 [1, 2] : vector<1x16x16xf32> to vector<1xf32>
      %31 = vector.shape_cast %30 : vector<1xf32> to vector<1x1x1xf32>
      %32 = vector.extract %31[0, 0, 0] : f32 from vector<1x1x1xf32>
      %33 = arith.addf %27, %32 : f32
      %c0_15 = arith.constant 0 : index
      %34 = memref.load %arg7[%c0_15] : memref<4xf32, #tpu.memory_space<smem>>
      memref.store %33, %arg7[%c0_15] : memref<4xf32, #tpu.memory_space<smem>>
      %35 = arith.sitofp %15 : vector<16x8xi32> to vector<16x8xf32>
      %cst_16 = arith.constant 0.142857149 : f32
      %36 = vector.broadcast %cst_16 : f32 to vector<16x8xf32>
      %37 = arith.mulf %35, %36 : vector<16x8xf32>
      %38 = arith.subf %37, %16 : vector<16x8xf32>
      %cst_17 = arith.constant 0.000000e+00 : f32
      %39 = vector.shape_cast %21 : vector<16x1xi1> to vector<16x1xi1>
      %40 = vector.broadcast %39 : vector<16x1xi1> to vector<16x8xi1>
      %41 = vector.broadcast %cst_17 : f32 to vector<16x8xf32>
      %42 = arith.select %40, %38, %41 : vector<16x8xi1>, vector<16x8xf32>
      %c1 = arith.constant 1 : index
      %43 = memref.load %arg7[%c1] : memref<4xf32, #tpu.memory_space<smem>>
      %44 = arith.mulf %42, %42 : vector<16x8xf32>
      %45 = vector.shape_cast %44 : vector<16x8xf32> to vector<1x16x8xf32>
      %cst_18 = arith.constant dense<0.000000e+00> : vector<1xf32>
      %46 = vector.multi_reduction <add>, %45, %cst_18 [1, 2] : vector<1x16x8xf32> to vector<1xf32>
      %47 = vector.shape_cast %46 : vector<1xf32> to vector<1x1x1xf32>
      %48 = vector.extract %47[0, 0, 0] : f32 from vector<1x1x1xf32>
      %49 = arith.addf %43, %48 : f32
      %c1_19 = arith.constant 1 : index
      %50 = memref.load %arg7[%c1_19] : memref<4xf32, #tpu.memory_space<smem>>
      memref.store %49, %arg7[%c1_19] : memref<4xf32, #tpu.memory_space<smem>>
      %51 = tpu.iota {dimensions = array<i32: 1>} : vector<16x16xi32>
      %cst_20 = arith.constant dense<0xFF800000> : vector<16xf32>
      %52 = vector.multi_reduction <maximumf>, %12, %cst_20 [1] : vector<16x16xf32> to vector<16xf32>
      %53 = vector.shape_cast %52 : vector<16xf32> to vector<16x1xf32>
      %54 = vector.broadcast %53 : vector<16x1xf32> to vector<16x16xf32>
      %55 = arith.cmpf oeq, %12, %54 : vector<16x16xf32>
      %c16_i32_21 = arith.constant 16 : i32
      %56 = vector.broadcast %c16_i32_21 : i32 to vector<16x16xi32>
      %57 = arith.select %55, %51, %56 : vector<16x16xi1>, vector<16x16xi32>
      %cst_22 = arith.constant dense<2147483647> : vector<16xi32>
      %58 = vector.multi_reduction <minsi>, %57, %cst_22 [1] : vector<16x16xi32> to vector<16xi32>
      %59 = vector.shape_cast %58 : vector<16xi32> to vector<16x1xi32>
      %cst_23 = arith.constant dense<0xFF800000> : vector<16xf32>
      %60 = vector.multi_reduction <maximumf>, %13, %cst_23 [1] : vector<16x16xf32> to vector<16xf32>
      %61 = vector.shape_cast %60 : vector<16xf32> to vector<16x1xf32>
      %62 = vector.broadcast %61 : vector<16x1xf32> to vector<16x16xf32>
      %63 = arith.cmpf oeq, %13, %62 : vector<16x16xf32>
      %c16_i32_24 = arith.constant 16 : i32
      %64 = vector.broadcast %c16_i32_24 : i32 to vector<16x16xi32>
      %65 = arith.select %63, %51, %64 : vector<16x16xi1>, vector<16x16xi32>
      %cst_25 = arith.constant dense<2147483647> : vector<16xi32>
      %66 = vector.multi_reduction <minsi>, %65, %cst_25 [1] : vector<16x16xi32> to vector<16xi32>
      %67 = vector.shape_cast %66 : vector<16xi32> to vector<16x1xi32>
      %c2 = arith.constant 2 : index
      %68 = memref.load %arg7[%c2] : memref<4xf32, #tpu.memory_space<smem>>
      %69 = arith.cmpi eq, %59, %67 : vector<16x1xi32>
      %70 = arith.andi %21, %69 : vector<16x1xi1>
      %cst_26 = arith.constant 1.000000e+00 : f32
      %cst_27 = arith.constant 0.000000e+00 : f32
      %71 = vector.broadcast %cst_26 : f32 to vector<16x1xf32>
      %72 = vector.broadcast %cst_27 : f32 to vector<16x1xf32>
      %73 = arith.select %70, %71, %72 : vector<16x1xi1>, vector<16x1xf32>
      %74 = vector.shape_cast %73 : vector<16x1xf32> to vector<1x16x1xf32>
      %cst_28 = arith.constant dense<0.000000e+00> : vector<1xf32>
      %75 = vector.multi_reduction <add>, %74, %cst_28 [1, 2] : vector<1x16x1xf32> to vector<1xf32>
      %76 = vector.shape_cast %75 : vector<1xf32> to vector<1x1x1xf32>
      %77 = vector.extract %76[0, 0, 0] : f32 from vector<1x1x1xf32>
      %78 = arith.addf %68, %77 : f32
      %c2_29 = arith.constant 2 : index
      %79 = memref.load %arg7[%c2_29] : memref<4xf32, #tpu.memory_space<smem>>
      memref.store %78, %arg7[%c2_29] : memref<4xf32, #tpu.memory_space<smem>>
      %cst_30 = arith.constant 7.000000e+00 : f32
      %80 = vector.broadcast %cst_30 : f32 to vector<16x8xf32>
      %81 = arith.mulf %16, %80 : vector<16x8xf32>
      %82 = math.roundeven %81 : vector<16x8xf32>
      %83 = arith.fptosi %82 : vector<16x8xf32> to vector<16x8xi32>
      %c3 = arith.constant 3 : index
      %84 = memref.load %arg7[%c3] : memref<4xf32, #tpu.memory_space<smem>>
      %85 = arith.cmpi eq, %83, %15 : vector<16x8xi32>
      %86 = vector.broadcast %21 : vector<16x1xi1> to vector<16x8xi1>
      %87 = arith.andi %86, %85 : vector<16x8xi1>
      %cst_31 = arith.constant 1.000000e+00 : f32
      %cst_32 = arith.constant 0.000000e+00 : f32
      %88 = vector.broadcast %cst_31 : f32 to vector<16x8xf32>
      %89 = vector.broadcast %cst_32 : f32 to vector<16x8xf32>
      %90 = arith.select %87, %88, %89 : vector<16x8xi1>, vector<16x8xf32>
      %91 = vector.shape_cast %90 : vector<16x8xf32> to vector<1x16x8xf32>
      %cst_33 = arith.constant dense<0.000000e+00> : vector<1xf32>
      %92 = vector.multi_reduction <add>, %91, %cst_33 [1, 2] : vector<1x16x8xf32> to vector<1xf32>
      %93 = vector.shape_cast %92 : vector<1xf32> to vector<1x1x1xf32>
      %94 = vector.extract %93[0, 0, 0] : f32 from vector<1x1x1xf32>
      %95 = arith.addf %84, %94 : f32
      %c3_34 = arith.constant 3 : index
      %96 = memref.load %arg7[%c3_34] : memref<4xf32, #tpu.memory_space<smem>>
      memref.store %95, %arg7[%c3_34] : memref<4xf32, #tpu.memory_space<smem>>
    } else {
    }
    %c0_i32_3 = arith.constant 0 : i32
    %9 = arith.cmpi eq, %arg1, %c0_i32_3 : i32
    %10 = arith.extui %9 : i1 to i32
    %c0_i32_4 = arith.constant 0 : i32
    %11 = arith.cmpi ne, %10, %c0_i32_4 : i32
    scf.if %11 {
      %12 = tpu.iota {dimensions = array<i32: 1>} : vector<8x128xi32>
      %c0_i32_5 = arith.constant 0 : i32
      %13 = vector.broadcast %c0_i32_5 : i32 to vector<8x128xi32>
      %14 = arith.cmpi eq, %12, %13 : vector<8x128xi32>
      %c0 = arith.constant 0 : index
      %15 = memref.load %arg7[%c0] : memref<4xf32, #tpu.memory_space<smem>>
      %c1_i32_6 = arith.constant 1 : i32
      %16 = vector.broadcast %c1_i32_6 : i32 to vector<8x128xi32>
      %17 = arith.cmpi eq, %12, %16 : vector<8x128xi32>
      %c1 = arith.constant 1 : index
      %18 = memref.load %arg7[%c1] : memref<4xf32, #tpu.memory_space<smem>>
      %c2_i32 = arith.constant 2 : i32
      %19 = vector.broadcast %c2_i32 : i32 to vector<8x128xi32>
      %20 = arith.cmpi eq, %12, %19 : vector<8x128xi32>
      %c2 = arith.constant 2 : index
      %21 = memref.load %arg7[%c2] : memref<4xf32, #tpu.memory_space<smem>>
      %c3_i32 = arith.constant 3 : i32
      %22 = vector.broadcast %c3_i32 : i32 to vector<8x128xi32>
      %23 = arith.cmpi eq, %12, %22 : vector<8x128xi32>
      %c3 = arith.constant 3 : index
      %24 = memref.load %arg7[%c3] : memref<4xf32, #tpu.memory_space<smem>>
      %cst = arith.constant 0.000000e+00 : f32
      %25 = vector.broadcast %24 : f32 to vector<8x128xf32>
      %26 = vector.broadcast %cst : f32 to vector<8x128xf32>
      %27 = arith.select %23, %25, %26 : vector<8x128xi1>, vector<8x128xf32>
      %28 = vector.broadcast %21 : f32 to vector<8x128xf32>
      %29 = arith.select %20, %28, %27 : vector<8x128xi1>, vector<8x128xf32>
      %30 = vector.broadcast %18 : f32 to vector<8x128xf32>
      %31 = arith.select %17, %30, %29 : vector<8x128xi1>, vector<8x128xf32>
      %32 = vector.broadcast %15 : f32 to vector<8x128xf32>
      %33 = arith.select %14, %32, %31 : vector<8x128xi1>, vector<8x128xf32>
      %c0_7 = arith.constant 0 : index
      %c0_8 = arith.constant 0 : index
      %34 = vector.load %arg6[%c0_7, %c0_8] : memref<8x128xf32, #tpu.memory_space<vmem>>, vector<8x128xf32>
      tpu.vector_store %arg6[%c0_7, %c0_8], %33 {strides = array<i32>} : memref<8x128xf32, #tpu.memory_space<vmem>>, vector<8x128xf32>,
    } else {
    }
    return
  }
  func.func @transform_0(%arg0: i32, %arg1: i32) -> (i32, i32) {
    %c1_i32 = arith.constant 1 : i32
    %0 = arith.muli %arg0, %c1_i32 : i32
    %1 = arith.addi %0, %arg1 : i32
    %c0_i32 = arith.constant 0 : i32
    %2 = arith.minsi %1, %c0_i32 : i32
    %c0_i32_0 = arith.constant 0 : i32
    %c0_i32_1 = arith.constant 0 : i32
    return %2, %c0_i32_0 : i32, i32
  }
  func.func @transform_1(%arg0: i32, %arg1: i32) -> (i32, i32) {
    %c1_i32 = arith.constant 1 : i32
    %0 = arith.muli %arg0, %c1_i32 : i32
    %1 = arith.addi %0, %arg1 : i32
    %c0_i32 = arith.constant 0 : i32
    %2 = arith.minsi %1, %c0_i32 : i32
    %c0_i32_0 = arith.constant 0 : i32
    %c0_i32_1 = arith.constant 0 : i32
    return %2, %c0_i32_0 : i32, i32
  }
  func.func @transform_2(%arg0: i32, %arg1: i32) -> (i32, i32) {
    %c1_i32 = arith.constant 1 : i32
    %0 = arith.muli %arg0, %c1_i32 : i32
    %1 = arith.addi %0, %arg1 : i32
    %c0_i32 = arith.constant 0 : i32
    %2 = arith.minsi %1, %c0_i32 : i32
    %c0_i32_0 = arith.constant 0 : i32
    %c0_i32_1 = arith.constant 0 : i32
    return %2, %c0_i32_0 : i32, i32
  }
  func.func @transform_3(%arg0: i32, %arg1: i32) -> (i32, i32) {
    %c1_i32 = arith.constant 1 : i32
    %0 = arith.muli %arg0, %c1_i32 : i32
    %1 = arith.addi %0, %arg1 : i32
    %c0_i32 = arith.constant 0 : i32
    %2 = arith.minsi %1, %c0_i32 : i32
    %c0_i32_0 = arith.constant 0 : i32
    %c0_i32_1 = arith.constant 0 : i32
    return %2, %c0_i32_0 : i32, i32
  }
  func.func @transform_4(%arg0: i32, %arg1: i32) -> (i32, i32) {
    %c0_i32 = arith.constant 0 : i32
    %c0_i32_0 = arith.constant 0 : i32
    return %arg0, %c0_i32 : i32, i32
  }
}

</mosaic_0001>

<bundles_post_ra>
// kernel: tpu_custom_call.1
= control target key start
LH: loop header
LB: loop body
LE: loop exit
PB: predicated region body
PF: predicated region fallthrough
CT: control target
= control target key end

     0   :  { %9 = vsyncpa [#allocation4], 0  ;;  %s1131_s0 = inlined_call_operand.vmem [shape: f32[16,16], index: 0, kind: input, shape index: {}]   ;;  %s1132_s1 = inlined_call_operand.vmem [shape: f32[16,16], index: 1, kind: input, shape index: {}]   ;;  %s1133_s2 = inlined_call_operand.vmem [shape: s8[16,8], index: 2, kind: input, shape index: {}]   ;;  %s1134_s3 = inlined_call_operand.vmem [shape: f32[16,8], index: 3, kind: input, shape index: {}]   ;;  %s1135_s4 = inlined_call_operand.hbm [shape: f32[16,128], index: 4, kind: output, shape index: {}]  }
   0x1   :  { %11 = vsyncpa [#allocation4 + $0x1], 0  ;;  %s929_s15 = smov 0   ;;  %s931_s16 = smov 0  }
   0x2   :  { %s933_s17 = smov 0   ;;  %s935_s18 = smov 0  }
   0x3   :  { %s937_s19 = smov 0   ;;  %s939_s20 = smov 0  }
   0x4 LB: > { %s720_s21 = sadd.s32 4294967295, %s899_s20   ;;  %s721_s22 = sadd.s32 4294967294, %s899_s20   ;;  %s899_s20 = sphi %s939_s20, %s17_s20   ;;  %s895_s19 = sphi %s937_s19, %s1149_s19   ;;  %s891_s18 = sphi %s935_s18, %s1148_s18   ;;  %s887_s17 = sphi %s933_s17, %s1147_s17   ;;  %s883_s16 = sphi %s931_s16, %s1146_s16   ;;  %s879_s15 = sphi %s929_s15, %s1145_s15  }
   0x5   : > { %s29_s23 = sadd.s32 1, %s895_s19  ;;  %s164_s24 = sadd.s32 1, %s887_s17 }
   0x6   : > { %p31_p0 = scmp.ge.s32.totalorder %s29_s23, 2  ;;  %p174_p1 = scmp.ne.s32.totalorder %s887_s17, %s883_s16 }
   0x7   : > { %p175_p2 = scmp.eq.s32.totalorder %s720_s21, 1  ;;  %p180_p3 = scmp.ne.s32.totalorder %s883_s16, %s879_s15 }
   0x8   : > { %s1151_s23 = smov (%p31_p0, %s29_s23), 0  ;;  %p181_p5 = scmp.eq.s32.totalorder %s721_s22, 1 }
   0x9   : > { %1138 = sst [smem:[#allocation6_spill]] %s1151_s23  ;;  %p969_p4 = por %p175_p2, %p174_p1 }
   0xa   : > { %s161_s26 = ssub.s32 %s895_s19, %s1151_s23  ;;  %p724_p6 = scmp.ge.s32.totalorder %s899_s20, 1 }
   0xb   : > { %p162_p7 = scmp.eq.s32.totalorder %s161_s26, 0  ;;  %p976_p8 = por %p181_p5, %p180_p3 }
   0xc   : > { %p259_p9 = scmp.lt.s32.totalorder %s899_s20, 3 }
   0xd   : > { %s982_s28 = scalar_select %p162_p7, %s887_s17, %s164_s24  }
   0xe   : > { %p260_p10 = pnand %p724_p6, %p259_p9 }
   0xf   : > { %s1136_s29 = sand.u32 (!%p260_p10), 1, %s883_s16   ;;  %p313_p11 = scmp.lt.s32.totalorder (!%p260_p10), %s891_s18, 0 }
  0x10   : > { %263 = sbr.rel (%p260_p10) target bundleno = 724 (0x2d4), region = 36  ;;  %s988_s30 = sshll.u32 (!%p260_p10), %s1136_s29, 3 }
  0x11   : > { %s901_s5 = smov (!%p260_p10), 0.0   ;;  %s311_s23 = scalar_lea.vmem (!%p260_p10), [#allocation3], %s988_s30 }
  0x12   : > { %365 = sst [smem:[#allocation2]] (!%p260_p10), %s901_s5 }
  0x13   : > { %367 = sst [smem:[#allocation2 + $0x1]] (!%p260_p10), %s901_s5 }
  0x14   : > { %369 = sst [smem:[#allocation2 + $0x2]] (!%p260_p10), %s901_s5 }
  0x15   : > { %371 = sst [smem:[#allocation2 + $0x3]] (!%p260_p10), %s901_s5 }
  0x17   : > { %s314_s6 = scalar_select %p313_p11, %s891_s18, 0 }
  0x19   : > { %s726_s8 = sshll.u32 %s314_s6, 1 }
  0x1a   : > { %p316_p12 = scmp.lt.s32.totalorder %s726_s8, 1 }
  0x1c   : > { %s1153_s8 = smov (!%p316_p12, %s726_s8), 1 }
  0x1d   : > { %s727_s9 = sshll.u32 %s1153_s8, 3  ;;  %s731_s10 = sshll.u32 %s1153_s8, 1 }
  0x1e   : > { %s319_s13 = scalar_lea.vmem %s1131_s0, %s727_s9  ;;  %s331_s22 = scalar_lea.vmem %s1132_s1, %s727_s9 }
  0x1f   : > { %s1001_s29 = scalar_lea.vmem %s1133_s2, %s731_s10  ;;  %s1006_s5 = scalar_lea.vmem %s1134_s3, %s727_s9 }
  0x20   : > { %s1141_s8 = sshll.u32 %s891_s18, 4 }
  0x21   : > { %p735_p13 = scmp.ge.s32.totalorder %s1141_s8, 16 }
  0x22   : > { %v1011_v0 = vld [vmem:[%s319_s13] sm:$0xff] (!%p735_p13)  ;;  %vm407_vm0 = vcmask (!%p735_p13), 130048   ;;  %v1015_v2 = vld [vmem:[%s319_s13 + $0x8] sm:$0xff] (!%p735_p13)  ;;  %v388_v8 = vlaneseq (!%p735_p13)  ;;  %s1142_s7 = sshll.u32 (!%p735_p13), %s891_s18, 4  ;;  %vm434_vm11 = vcmask (!%p735_p13), 64512   ;;  %s736_s9 = sld [smem:[#allocation2 + $0x1]] (!%p735_p13) }
  0x23   : > { %377 = sbr.rel (%p735_p13) target bundleno = 697 (0x2b9), region = 44  ;;  %v1013_v1 = vld [vmem:[%s331_s22] sm:$0xff] (!%p735_p13)  ;;  %v452_v3 = vsel (!%p735_p13), %vm407_vm0, %v1011_v0, -inf  ;;  %v1021_v5 = vld [vmem:[%s331_s22 + $0x8] sm:$0xff] (!%p735_p13)  ;;  %v455_v6 = vsel (!%p735_p13), %vm407_vm0, %v1015_v2, -inf  ;;  %v391_v55 = vstv (!%p735_p13), %s1142_s7  ;;  %s737_s14 = sld [smem:[#allocation2 + $0x2]] (!%p735_p13) }
  0x24   : > { %v492_v4 = vsel (!%p735_p13), %vm407_vm0, %v1013_v1, -inf  ;;  %453 = vmax.xlane.f32.xlu0 (!%p735_p13), %v452_v3  ;;  %v495_v7 = vsel (!%p735_p13), %vm407_vm0, %v1021_v5, -inf  ;;  %v451_v9 = vand.u32 (!%p735_p13), 127, %v388_v8  ;;  %v747_v46 = vld [vmem:[%s1001_s29] sm:$0xf] (!%p735_p13)   ;;  %v389_v49 = vshrl.u32 (!%p735_p13), %v388_v8, 7 }
  0x25   : > { %493 = vmax.xlane.f32.xlu1 (!%p735_p13), %v492_v4  ;;  %v748_v47 = vunpack.c.0.s8 (!%p735_p13), %v747_v46  ;;  %v749_v48 = vunpack.c.1.s8 (!%p735_p13), %v747_v46  ;;  %v396_v52 = vsub.f32 (!%p735_p13), %v1011_v0, %v1013_v1  ;;  %v397_v54 = vsub.f32 (!%p735_p13), %v1015_v2, %v1021_v5  ;;  %v386_v58 = vld [vmem:[%s1006_s5] sm:$0xff] (!%p735_p13)  ;;  %v387_v59 = vld [vmem:[%s1006_s5 + $0x8] sm:$0xff] (!%p735_p13)  ;;  %s404_s29 = sld [smem:[#allocation2]] (!%p735_p13)  ;;  %s738_s21 = sld [smem:[#allocation2 + $0x3]] (!%p735_p13) }
  0x26   : > { %v390_v53 = vadd.s32 (!%p735_p13), 8, %v389_v49  ;;  %v392_v60 = vadd.s32 (!%p735_p13), %v391_v55, %v389_v49  ;;  %v555_v8 = vmul.f32 (!%p735_p13), 7.0, %v386_v58 }
  0x27   : > { %v423_v50 = vcvt.s32.f32 (!%p735_p13), %v748_v47  ;;  %v424_v51 = vcvt.s32.f32 (!%p735_p13), %v749_v48 }
  0x28   : > { %456 = vmax.xlane.f32.xlu0 (!%p735_p13), %v455_v6  ;;  %v393_v61 = vadd.s32 (!%p735_p13), %v391_v55, %v390_v53  ;;  %vm394_vm9 = vcmp.lt.s32.totalorder (!%p735_p13), %v392_v60, 16 }
  0x29   : > { %496 = vmax.xlane.f32.xlu1 (!%p735_p13), %v495_v7  ;;  %v425_v56 = vmul.f32 (!%p735_p13), 0.14285715, %v423_v50  ;;  %v426_v57 = vmul.f32 (!%p735_p13), 0.14285715, %v424_v51 }
  0x2a   : > { %vm395_vm10 = vcmp.lt.s32.totalorder %v393_v61, 16 }
  0x2b   : > { %v427_v62 = vsub.f32 %v425_v56, %v386_v58  ;;  %v428_v63 = vsub.f32 %v426_v57, %v387_v59 }
  0x2d   : > { %v429_v3 = vsel %vm394_vm9, %v427_v62, 0.0 }
  0x2e   : > { %v432_v4 = vmul.f32 %v429_v3, %v429_v3 }
  0xb1   : > { %v454_v10 = vpop.xlane.xlu0 %453 }
  0xb2   : > { %v494_v11 = vpop.xlane.xlu1 %493  ;;  %vm458_vm1 = vcmp.eq.f32.partialorder %v1011_v0, %v454_v10  ;;  %v430_v0 = vsel %vm395_vm10, %v428_v63, 0.0  ;;  %v435_v10 = vsel %vm434_vm11, %v432_v4, 0.0 }
  0xb3   : > { %vm498_vm2 = vcmp.eq.f32.partialorder %v1013_v1, %v494_v11  ;;  %v460_v12 = vsel %vm458_vm1, %v451_v9, 16  ;;  %v402_v1 = vsel %vm394_vm9, %v396_v52, 0.0 }
  0xb4   : > { %v500_v13 = vsel %vm498_vm2, %v451_v9, 16  ;;  %v462_v14 = vsel %vm407_vm0, %v460_v12, 2147483647  ;;  %v405_v6 = vmul.f32 %v402_v1, %v402_v1 }
  0xb5   : > { %v502_v15 = vsel %vm407_vm0, %v500_v13, 2147483647  ;;  %v457_v16 = vpop.xlane.xlu0 %456  ;;  %v464_v18 = vshra.s32 %v462_v14, 16  ;;  %v463_v30 = vand.u32 65535, %v462_v14 }
  0xb6   : > { %v497_v17 = vpop.xlane.xlu1 %496  ;;  %v504_v19 = vshra.s32 %v502_v15, 16  ;;  %vm459_vm3 = vcmp.eq.f32.partialorder %v1015_v2, %v457_v16  ;;  %v503_v34 = vand.u32 65535, %v502_v15  ;;  %v403_v2 = vsel %vm395_vm10, %v397_v54, 0.0 }
  0xb7   : > { %vm499_vm4 = vcmp.eq.f32.partialorder %v1021_v5, %v497_v17  ;;  %v461_v20 = vsel %vm459_vm3, %v451_v9, 16  ;;  %v466_v22 = vcvt.s32.f32 %v464_v18  ;;  %v465_v32 = vcvt.s32.f32 %v463_v30 }
  0xb8   : > { %v501_v21 = vsel %vm499_vm4, %v451_v9, 16  ;;  %v477_v23 = vsel %vm407_vm0, %v461_v20, 2147483647  ;;  %v506_v25 = vcvt.s32.f32 %v504_v19  ;;  %v505_v39 = vcvt.s32.f32 %v503_v34 }
  0xb9   : > { %v517_v24 = vsel %vm407_vm0, %v501_v21, 2147483647  ;;  %467 = vmin.xlane.f32.xlu0 %v466_v22  ;;  %v479_v26 = vshra.s32 %v477_v23, 16  ;;  %v478_v33 = vand.u32 65535, %v477_v23  ;;  %v433_v5 = vmul.f32 %v430_v0, %v430_v0 }
  0xba   : > { %v519_v27 = vshra.s32 %v517_v24, 16  ;;  %v518_v40 = vand.u32 65535, %v517_v24  ;;  %v406_v7 = vmul.f32 %v403_v2, %v403_v2  ;;  %v556_v9 = vmul.f32 7.0, %v387_v59 }
  0xbb   : > { %v481_v28 = vcvt.s32.f32 %v479_v26  ;;  %v480_v38 = vcvt.s32.f32 %v478_v33  ;;  %v436_v11 = vsel %vm434_vm11, %v433_v5, 0.0  ;;  %v408_v12 = vsel %vm407_vm0, %v405_v6, 0.0 }
  0xbc   : > { %v521_v29 = vcvt.s32.f32 %v519_v27  ;;  %v520_v44 = vcvt.s32.f32 %v518_v40  ;;  %v409_v13 = vsel %vm407_vm0, %v406_v7, 0.0  ;;  %v437_v14 = vadd.f32 %v436_v11, %v435_v10 }
  0xbd   : > { %507 = vmin.xlane.f32.xlu0 %v506_v25  ;;  %482 = vmin.xlane.f32.xlu1 %v481_v28  ;;  %v410_v15 = vadd.f32 %v409_v13, %v408_v12  ;;  %v758_v16 = vcvt.f32.s32 %v555_v8  ;;  %v761_v17 = vcvt.f32.s32 %v556_v9  ;;  %v902_v18 = vmov 0.0  }
  0xbe   : > { %vm539_vm3 = vcmask 7168  }
  0xbf   : > { %vm560_vm12 = vcmp.eq.s32.totalorder %v758_v16, %v748_v47  ;;  %vm561_vm13 = vcmp.eq.s32.totalorder %v761_v17, %v749_v48 }
  0xc0   : > { %vm562_vm14 = vmand %vm394_vm9, %vm560_vm12 }
  0xc1   : > { %522 = vmin.xlane.f32.xlu1 %v521_v29  ;;  %vm563_vm15 = vmand %vm395_vm10, %vm561_vm13  ;;  %v564_v19 = vsel %vm562_vm14, 1.0, %v902_v18 }
  0xc2   : > { %v565_v20 = vsel %vm563_vm15, 1.0, %v902_v18  ;;  %v566_v21 = vsel %vm434_vm11, %v564_v19, 0.0 }
 0x146   : > { %v1035_v31 = vpop.xlane.xlu0 %467 }
 0x147   : > { %vm469_vm5 = vcmp.eq.f32.partialorder %v466_v22, %v1035_v31  ;;  %v567_v22 = vsel %vm434_vm11, %v565_v20, 0.0  ;;  %v474_v24 = vcvt.f32.s32 %v1035_v31 }
 0x148   : > { %v470_v35 = vsel %vm469_vm5, %v465_v32, inf  ;;  %v568_v23 = vadd.f32 %v567_v22, %v566_v21 }
 0x149   : > { %471 = vmin.xlane.f32.xlu0 %v470_v35 }
 0x14a   : > { %v1038_v36 = vpop.xlane.xlu1 %482  ;;  %v1040_v37 = vpop.xlane.xlu0 %507 }
 0x14b   : > { %vm484_vm6 = vcmp.eq.f32.partialorder %v481_v28, %v1038_v36  ;;  %vm509_vm7 = vcmp.eq.f32.partialorder %v506_v25, %v1040_v37  ;;  %v514_v26 = vcvt.f32.s32 %v1040_v37  ;;  %v475_v28 = vshll.u32 %v474_v24, 16 }
 0x14c   : > { %v485_v41 = vsel %vm484_vm6, %v480_v38, inf  ;;  %v510_v42 = vsel %vm509_vm7, %v505_v39, inf  ;;  %v489_v32 = vcvt.f32.s32 %v1038_v36 }
 0x14d   : > { %486 = vmin.xlane.f32.xlu1 %v485_v41  ;;  %511 = vmin.xlane.f32.xlu0 %v510_v42  ;;  %v515_v33 = vshll.u32 %v514_v26, 16 }
 0x14e   : > { %v1044_v43 = vpop.xlane.xlu1 %522  ;;  %v490_v42 = vshll.u32 %v489_v32, 16 }
 0x14f   : > { %vm524_vm8 = vcmp.eq.f32.partialorder %v521_v29, %v1044_v43  ;;  %v529_v34 = vcvt.f32.s32 %v1044_v43 }
 0x150   : > { %v525_v45 = vsel %vm524_vm8, %v520_v44, inf }
 0x151   : > { %526 = vmin.xlane.f32.xlu1 %v525_v45  ;;  %411 = vadd.xlane.f32.xlu0 %v410_v15  ;;  %v530_v44 = vshll.u32 %v529_v34, 16 }
 0x155   : > { %438 = vadd.xlane.f32.xlu1 %v437_v14 }
 0x159   : > { %569 = vadd.xlane.f32.xlu1 %v568_v23 }
 0x1d6   : > { %v472_v25 = vpop.xlane.xlu0 %471 }
 0x1d7   : > { %v473_v27 = vcvt.f32.s32 %v472_v25 }
 0x1d9   : > { %v476_v38 = vadd.s32 %v475_v28, %v473_v27 }
 0x1da   : > { %v487_v29 = vpop.xlane.xlu1 %486  ;;  %v512_v30 = vpop.xlane.xlu0 %511 }
 0x1db   : > { %v513_v35 = vcvt.f32.s32 %v512_v30  ;;  %v488_v39 = vcvt.f32.s32 %v487_v29 }
 0x1dd   : > { %v516_v40 = vadd.s32 %v515_v33, %v513_v35  ;;  %v491_v37 = vadd.s32 %v490_v42, %v488_v39 }
 0x1de   : > { %v527_v41 = vpop.xlane.xlu1 %526  ;;  %v412_v50 = vpop.xlane.xlu0 %411 }
 0x1df   : > { %vm533_vm0 = vcmp.eq.s32.totalorder %v476_v38, %v516_v40  ;;  %v528_v31 = vcvt.f32.s32 %v527_v41  ;;  %v413_v52 = vrot.slane %v412_v50, 4 }
 0x1e0   : > { %vm535_vm1 = vmand %vm394_vm9, %vm533_vm0 }
 0x1e1   : > { %v531_v45 = vadd.s32 %v530_v44, %v528_v31  ;;  %v537_v46 = vsel %vm535_vm1, 1.0, %v902_v18  ;;  %v414_v54 = vadd.f32 %v413_v52, %v412_v50 }
 0x1e2   : > { %v540_v43 = vsel %vm539_vm3, %v537_v46, 0.0  ;;  %v439_v49 = vpop.xlane.xlu1 %438 }
 0x1e3   : > { %vm534_vm2 = vcmp.eq.s32.totalorder %v491_v37, %v531_v45  ;;  %v440_v51 = vrot.slane %v439_v49, 4  ;;  %v415_v56 = vrot.slane %v414_v54, 2 }
 0x1e4   : > { %vm536_vm4 = vmand %vm395_vm10, %vm534_vm2 }
 0x1e5   : > { %v538_v36 = vsel %vm536_vm4, 1.0, %v902_v18  ;;  %v441_v53 = vadd.f32 %v440_v51, %v439_v49  ;;  %v416_v57 = vadd.f32 %v415_v56, %v414_v54 }
 0x1e6   : > { %v541_v47 = vsel %vm539_vm3, %v538_v36, 0.0  ;;  %v570_v63 = vpop.xlane.xlu1 %569 }
 0x1e7   : > { %v542_v48 = vadd.f32 %v541_v47, %v540_v43  ;;  %v442_v55 = vrot.slane %v441_v53, 2  ;;  %v417_v59 = vrot.slane %v416_v57, 1  ;;  %v571_v3 = vrot.slane %v570_v63, 4 }
 0x1e9   : > { %543 = vadd.xlane.f32.xlu0 %v542_v48  ;;  %v443_v58 = vadd.f32 %v442_v55, %v441_v53  ;;  %v418_v62 = vadd.f32 %v417_v59, %v416_v57  ;;  %v572_v0 = vadd.f32 %v571_v3, %v570_v63 }
 0x1eb   : > { %v444_v60 = vrot.slane %v443_v58, 1  ;;  %750 = vpush %v418_v62  ;;  %v573_v1 = vrot.slane %v572_v0, 2 }
 0x1ed   : > { %v445_v61 = vadd.f32 %v444_v60, %v443_v58  ;;  %v574_v6 = vadd.f32 %v573_v1, %v572_v0 }
 0x1ef   : > { %752 = vpush %v445_v61  ;;  %v575_v9 = vrot.slane %v574_v6, 1 }
 0x1f1   : > { %v576_v12 = vadd.f32 %v575_v9, %v574_v6 }
 0x21c   : > { %s751_s10 = spop %750 }
 0x21d   : > { %s420_s11 = sadd.f32 %s751_s10, %s404_s29 }
 0x21f   : > { %422 = sst [smem:[#allocation2]] %s420_s11 }
 0x220   : > { %s753_s12 = spop %752 }
 0x221   : > { %s447_s13 = sadd.f32 %s753_s12, %s736_s9 }
 0x223   : > { %449 = sst [smem:[#allocation2 + $0x1]] %s447_s13 }
 0x276   : > { %v544_v2 = vpop.xlane.xlu0 %543 }
 0x277   : > { %v545_v4 = vrot.slane %v544_v2, 4 }
 0x279   : > { %v546_v5 = vadd.f32 %v545_v4, %v544_v2 }
 0x27b   : > { %v547_v7 = vrot.slane %v546_v5, 2 }
 0x27d   : > { %v548_v8 = vadd.f32 %v547_v7, %v546_v5 }
 0x27f   : > { %v549_v10 = vrot.slane %v548_v8, 1 }
 0x281   : > { %v550_v11 = vadd.f32 %v549_v10, %v548_v8 }
 0x283   : > { %754 = vpush %v550_v11 }
 0x284   : > { %762 = vpush %v576_v12 }
 0x2b4   : > { %s755_s22 = spop %754 }
 0x2b5   : > { %s552_s24 = sadd.f32 %s755_s22, %s737_s14  ;;  %s763_s26 = spop %762 }
 0x2b6   : > { %s578_s6 = sadd.f32 %s763_s26, %s738_s21 }
 0x2b7   : > { %554 = sst [smem:[#allocation2 + $0x2]] %s552_s24 }
 0x2b8   : > { %580 = sst [smem:[#allocation2 + $0x3]] %s578_s6 }
 0x2b9 PF: > { %v584_v13 = vlaneseq  ;;  %s587_s5 = sld [smem:[#allocation2]]  ;;  %s739_s8 = sld [smem:[#allocation2 + $0x1]] }
 0x2ba   : > { %s740_s7 = sld [smem:[#allocation2 + $0x2]]  ;;  %s741_s29 = sld [smem:[#allocation2 + $0x3]] }
 0x2bb   : > { %v585_v14 = vand.u32 127, %v584_v13  ;;  %s743_s9 = sshll.u32 %s891_s18, 7  ;;  %s617_s10 = sshll.u32 %s311_s23, 4  ;;  %s1082_s10 = int_to_ptr.vmem [resolvable:$true] %s617_s10 }
 0x2bc   : > { %s1080_s13 = scalar_lea.hbm %s1135_s4, %s743_s9  ;;  %s1143_s18 = sand.u32 1, %s883_s16  }
 0x2bd   : > { %vm592_vm5 = vcmp.eq.s32.totalorder %v585_v14, 3  ;;  %vm590_vm6 = vcmp.eq.s32.totalorder %v585_v14, 2  ;;  %vm588_vm7 = vcmp.eq.s32.totalorder %v585_v14, 1  ;;  %vm586_vm8 = vcmp.eq.s32.totalorder %v585_v14, 0  ;;  %s604_s14 = scalar_lea.sflag [#allocation4], %s1143_s18  ;;  %s821_s21 = scalar_lea.vmem %s1082_s10, 128 }
 0x2be   : > { %p822_p0 = scmp.ne.s32.totalorder %s1082_s10, %s821_s21  ;;  %s903_s22 = smov [#allocation3]  }
 0x2bf   : > { %v598_v17 = vstv %s739_s8  ;;  %v600_v19 = vstv %s587_s5  ;;  %s825_s24 = sshll.u32 %s903_s22, 4  ;;  %s826_s24 = int_to_ptr.vmem [resolvable:$false] %s825_s24 }
 0x2c0   : > { %v594_v15 = vstv %s741_s29  ;;  %v596_v16 = vstv %s740_s7  ;;  %p823_p1 = pnand %p822_p0, %p969_p4  ;;  %s827_s26 = scalar_lea.vmem %s826_s24, 256 }
 0x2c1   : > { %v595_v18 = vsel %vm592_vm5, %v594_v15, 0.0  ;;  %p828_p3 = scmp.lt.s32.totalorder %s1082_s10, %s826_s24  ;;  %p829_p5 = scmp.lt.s32.totalorder %s827_s26, %s821_s21 }
 0x2c2   : > { %v597_v20 = vsel %vm590_vm6, %v596_v16, %v595_v18  ;;  %p824_p2 = pneg %p823_p1 }
 0x2c3   : > { %v599_v21 = vsel %vm588_vm7, %v598_v17, %v597_v20  ;;  %p830_p6 = por %p829_p5, %p828_p3 }
 0x2c4   : > { %v601_v22 = vsel %vm586_vm8, %v600_v19, %v599_v21 }
 0x2c5   : > { %602 = vst [vmem:[%s311_s23] sm:$0xff] %v601_v22  ;;  %p831_p7 = pnand %p830_p6, %p824_p2 }
 0x2c7   : > { %834 = shalt.err (!%p831_p7)
}
 0x2c8   : > { %s835_s23 = scalar_lea.hbm %s1080_s13, 128  ;;  %s839_s5 = scalar_lea.hbm %s1135_s4, 256 }
 0x2c9   : > { %p836_p9 = scmp.ne.s32.totalorder %s1080_s13, %s835_s23  ;;  %p840_p12 = scmp.lt.u32.totalorder %s1080_s13, %s1135_s4 }
 0x2ca   : > { %p841_p13 = scmp.lt.u32.totalorder %s839_s5, %s835_s23  ;;  %p843_p1 = scmp.lt.u32.totalorder %s835_s23, %s1080_s13 }
 0x2cb   : > { %p837_p10 = pnand %p836_p9, %p969_p4 }
 0x2cc   : > { %p842_p0 = por %p841_p13, %p840_p12 }
 0x2cd   : > { %p838_p11 = pneg %p837_p10 }
 0x2ce   : > { %p844_p2 = por %p843_p1, %p842_p0 }
 0x2d0   : > { %p845_p3 = pnand %p844_p2, %p838_p11 }
 0x2d2   : > { %848 = shalt.err (!%p845_p3)
}
 0x2d3   : > { %764 = dma.vmem_to_hbm [thread:$0]  (%p969_p4), %s1082_s10, 128, %s1080_s13, %s604_s14  }
 0x2d4 PF: > { %p770_p5 = scmp.ge.s32.totalorder %s899_s20, 2  ;;  %s629_s29 = sand.u32 1, %s879_s15  }
 0x2d5   : > { %s630_s9 = scalar_lea.sflag [#allocation4], %s629_s29 }
 0x2d6   : > { %p767_p6 = pnand %p770_p5, %p976_p8 }
 0x2d8   : > { %874 = dma.done.wait (!%p767_p6), %s630_s9, 128  }
 0x2d9   : > { %876 = vsyncadd (!%p767_p6), %s630_s9, 4294967168  ;;  %s17_s20 = sadd.s32 1, %s899_s20   ;;  %s1144_s25 = sld [smem:[#allocation6_spill]] }
 0x2da   : > { %p14_p7 = scmp.ge.s32.totalorder %s17_s20, 4   ;;  %s1145_s15 = smov %s883_s16 }
 0x2db   : > { %s1146_s16 = smov %s887_s17  ;;  %s1147_s17 = smov %s982_s28 }
 0x2dc   : > { %s1148_s18 = smov %s895_s19  ;;  %16 = sbr.rel (!%p14_p7) target bundleno = 4 (0x4), region = 100 }
 0x2df   : > { %s1149_s19 = smov %s1144_s25 }
 0x2e3   :  { %635 = vsyncpa [#allocation4], 1 }
 0x2e4   :  { %637 = vsyncpa [#allocation4 + $0x1], 1 }

</bundles_post_ra>
